<compile_context>
chip_gen: v6e
topology: v6e:2x2x1
jax: 0.10.0
libtpu: 0.0.40
codegen_flags: <defaults>
</compile_context>

<pallas_src>
import functools

import jax
import jax.numpy as jnp
from jax.experimental import pallas as pl
from jax.experimental.pallas import tpu as pltpu


def _round_up(x, n):
    return ((x + n - 1) // n) * n


def _choose_tile_m(m, d, k, tile_m, vmem_budget_bytes=20 * 1024 * 1024):
    """Pick a row-tile size: big for mem-bound throughput, but within a VMEM
    budget that is safe on all of v5e / v6e / v7x (double-buffered streams +
    resident codebook + in-body (TM, K) temporaries)."""
    tile_m = max(8, min(_round_up(tile_m, 8), _round_up(m, 8)))
    while True:
        stream = 2 * tile_m * (2 * d + k + 1)          # x in + quant/enc/idx out, x2 buffers
        resident = k * d + k + 2 * (8 * 128 + 8 * k)   # codebook, ||e||^2, partial-sum tiles
        temps = 3 * tile_m * k + 2 * tile_m * d        # dist / enc / iota + x / quant values
        if 4 * (stream + resident + temps) <= vmem_budget_bytes or tile_m <= 8:
            return tile_m
        tile_m = max(8, ((tile_m // 2) // 8) * 8)


def _vq_kernel(flat_ref, emb_ref, w2_ref,
               quant_ref, enc_ref, idx_ref, loss_part_ref, cnt_part_ref,
               *, n_rows, tile_m, num_emb):
    i = pl.program_id(0)

    x = flat_ref[...]                                   # (TM, D) f32
    w = emb_ref[...]                                    # (K,  D) f32
    w2 = w2_ref[...]                                    # (1,  K) f32  == ||e_k||^2

    # argmin of the squared distance is invariant to the per-row ||x||^2 term,
    # so the score is just ||e||^2 - 2 x.e   (hot path: MXU matmul contracting
    # the codebook's D axis directly -- no w.T materialization per step)
    xw = jax.lax.dot_general(x, w, (((1,), (1,)), ((), ())),
                             preferred_element_type=jnp.float32)   # (TM, K)
    dist = w2 - 2.0 * xw

    # argmin over codebook axis (first occurrence on ties, like torch.argmin)
    min_d = jnp.min(dist, axis=1, keepdims=True)        # (TM, 1)
    col = jax.lax.broadcasted_iota(jnp.int32, dist.shape, 1)
    idx = jnp.min(jnp.where(dist == min_d, col, num_emb),
                  axis=1, keepdims=True)                # (TM, 1) int32

    # one-hot encodings and codebook lookup (one-hot @ embedding, like torch)
    enc = (col == idx).astype(jnp.float32)              # (TM, K)
    quant = jnp.dot(enc, w, preferred_element_type=jnp.float32)   # (TM, D)

    quant_ref[...] = quant
    enc_ref[...] = enc
    idx_ref[...] = idx

    # rows >= n_rows are wrapper padding -> exclude them from the statistics
    row = jax.lax.broadcasted_iota(jnp.int32, (tile_m, 1), 0) + i * tile_m
    valid = (row < n_rows).astype(jnp.float32)          # (TM, 1)

    # Per-block partial sums.  Each grid step writes its OWN block (no shared
    # accumulator), so the grid axis is race-free and can be "parallel"
    # (megacore on v7x).  The scalar / (1,K) sums are broadcast over a full
    # (8,128)/(8,K) tile to keep the output blocks layout-friendly; the
    # wrapper divides the replication factor back out.
    loss_blk = jnp.sum(valid * (quant - x) ** 2, axis=(0, 1), keepdims=True)  # (1, 1)
    cnt_blk = jnp.sum(enc * valid, axis=0, keepdims=True)                     # (1, K)
    loss_part_ref[...] = jnp.broadcast_to(loss_blk[None], loss_part_ref.shape)
    cnt_part_ref[...] = jnp.broadcast_to(cnt_blk[None], cnt_part_ref.shape)


def vector_quantize(x_nchw, embedding, commitment_cost=0.25, tile_m=512):
    """Pallas implementation of VectorQuantizer.forward.

    Returns (loss, quantized_nchw, perplexity, encodings, encoding_indices).
    """
    n, c, h, w = x_nchw.shape
    k, d = embedding.shape
    assert c == d, "channel dim must equal embedding_dim"

    emb = embedding.astype(jnp.float32)
    flat = jnp.transpose(x_nchw, (0, 2, 3, 1)).reshape(-1, d).astype(jnp.float32)
    m = flat.shape[0]

    tile_m = _choose_tile_m(m, d, k, tile_m)
    grid = pl.cdiv(m, tile_m)
    m_pad = grid * tile_m
    flat_p = flat if m_pad == m else jnp.pad(flat, ((0, m_pad - m), (0, 0)))

    # codebook-invariant ||e||^2, computed once (not per grid step)
    w2 = jnp.sum(emb * emb, axis=1)[None, :]             # (1, K)

    kernel = functools.partial(_vq_kernel, n_rows=m, tile_m=tile_m, num_emb=k)

    quant_p, enc_p, idx_p, loss_parts, cnt_parts = pl.pallas_call(
        kernel,
        out_shape=(
            jax.ShapeDtypeStruct((m_pad, d), jnp.float32),      # quantized (flat)
            jax.ShapeDtypeStruct((m_pad, k), jnp.float32),      # encodings (one-hot)
            jax.ShapeDtypeStruct((m_pad, 1), jnp.int32),        # encoding_indices
            jax.ShapeDtypeStruct((grid, 8, 128), jnp.float32),  # per-block sq-err sums
            jax.ShapeDtypeStruct((grid, 8, k), jnp.float32),    # per-block code counts
        ),
        grid_spec=pltpu.PrefetchScalarGridSpec(
            num_scalar_prefetch=0,
            grid=(grid,),
            in_specs=[
                pl.BlockSpec((tile_m, d), lambda i: (i, 0)),    # input rows tile
                pl.BlockSpec((k, d), lambda i: (0, 0)),         # full codebook (resident)
                pl.BlockSpec((1, k), lambda i: (0, 0)),         # ||e||^2 (resident)
            ],
            out_specs=[
                pl.BlockSpec((tile_m, d), lambda i: (i, 0)),
                pl.BlockSpec((tile_m, k), lambda i: (i, 0)),
                pl.BlockSpec((tile_m, 1), lambda i: (i, 0)),
                pl.BlockSpec((1, 8, 128), lambda i: (i, 0, 0)),
                pl.BlockSpec((1, 8, k), lambda i: (i, 0, 0)),
            ],
        ),
        compiler_params=pltpu.CompilerParams(
            dimension_semantics=("parallel",),
            vmem_limit_bytes=32 * 1024 * 1024),
    )(flat_p, emb, w2)

    # finalize the tiny reductions in the wrapper (O(grid * K) work)
    mse = jnp.sum(loss_parts) / (8.0 * 128.0 * m * d)
    loss = (1.0 + commitment_cost) * mse                 # q_latent + cc * e_latent (fwd value)
    avg_probs = jnp.sum(cnt_parts, axis=(0, 1)) / (8.0 * m)
    perplexity = jnp.exp(-jnp.sum(avg_probs * jnp.log(avg_probs + 1e-10)))

    quantized = jnp.transpose(quant_p[:m].reshape(n, h, w, d), (0, 3, 1, 2))
    encodings = enc_p[:m]
    indices = idx_p[:m]
    return loss, quantized, perplexity, encodings, indices


if __name__ == "__main__":
    num_embeddings, embedding_dim = 64, 32
    batch, spatial = 2, 8
    commitment_cost = 0.25

    key = jax.random.PRNGKey(0)
    kx, ke = jax.random.split(key)
    x = jax.random.normal(kx, (batch, embedding_dim, spatial, spatial),
                          dtype=jnp.float32)
    # deterministic init matching nn.Embedding(...).weight.data.uniform_(-1/K, 1/K)
    embedding = jax.random.uniform(
        ke, (num_embeddings, embedding_dim),
        minval=-1.0 / num_embeddings, maxval=1.0 / num_embeddings,
        dtype=jnp.float32)

    outs = vector_quantize(x, embedding, commitment_cost)
    loss, quantized, perplexity, encodings, indices = jax.block_until_ready(outs)

    # pure-JAX reference check
    flat = jnp.transpose(x, (0, 2, 3, 1)).reshape(-1, embedding_dim)
    dist = (jnp.sum(flat ** 2, axis=1, keepdims=True)
            + jnp.sum(embedding ** 2, axis=1)
            - 2.0 * jnp.dot(flat, embedding.T,
                            precision=jax.lax.Precision.HIGHEST))
    ref_idx = jnp.argmin(dist, axis=1)
    ref_quant_flat = embedding[ref_idx]
    ref_quant = jnp.transpose(
        ref_quant_flat.reshape(batch, spatial, spatial, embedding_dim),
        (0, 3, 1, 2))
    ref_mse = jnp.mean((ref_quant_flat - flat) ** 2)
    ref_loss = (1.0 + commitment_cost) * ref_mse
    ref_avg = jnp.mean(jax.nn.one_hot(ref_idx, num_embeddings), axis=0)
    ref_perp = jnp.exp(-jnp.sum(ref_avg * jnp.log(ref_avg + 1e-10)))

    assert jnp.array_equal(indices[:, 0], ref_idx.astype(jnp.int32))
    assert jnp.allclose(quantized, ref_quant, atol=1e-5)
    assert jnp.allclose(encodings,
                        jax.nn.one_hot(ref_idx, num_embeddings), atol=1e-6)
    assert jnp.allclose(loss, ref_loss, rtol=1e-4, atol=1e-6)
    assert jnp.allclose(perplexity, ref_perp, rtol=1e-4, atol=1e-5)

    print("KERNEL_OK")
</pallas_src>

<mosaic_0001>
module attributes {stable_mosaic.version = 11 : i64} {
  func.func @_vq_kernel(%arg0: i32, %arg1: memref<128x32xf32, #tpu.memory_space<vmem>>, %arg2: memref<64x32xf32, #tpu.memory_space<vmem>>, %arg3: memref<1x64xf32, #tpu.memory_space<vmem>>, %arg4: memref<128x32xf32, #tpu.memory_space<vmem>>, %arg5: memref<128x64xf32, #tpu.memory_space<vmem>>, %arg6: memref<128x1xi32, #tpu.memory_space<vmem>>, %arg7: memref<1x8x128xf32, #tpu.memory_space<vmem>>, %arg8: memref<1x8x64xf32, #tpu.memory_space<vmem>>) attributes {dimension_semantics = [#tpu.dimension_semantics<parallel>], iteration_bounds = array<i64: 1>, scalar_prefetch = 0 : i64, scratch_operands = 0 : i64, tpu.core_type = #tpu.core_type<tc>, window_params = [{transform_indices = @transform_0, window_bounds = array<i64: 128, 32>}, {pipeline_mode = #tpu.pipeline_mode<synchronous>, transform_indices = @transform_1, window_bounds = array<i64: 64, 32>}, {pipeline_mode = #tpu.pipeline_mode<synchronous>, transform_indices = @transform_2, window_bounds = array<i64: 1, 64>}, {transform_indices = @transform_3, window_bounds = array<i64: 128, 32>}, {transform_indices = @transform_4, window_bounds = array<i64: 128, 64>}, {transform_indices = @transform_5, window_bounds = array<i64: 128, 1>}, {transform_indices = @transform_6, window_bounds = array<i64: 1, 8, 128>}, {transform_indices = @transform_7, window_bounds = array<i64: 1, 8, 64>}]} {
    %c0 = arith.constant 0 : index
    %c0_0 = arith.constant 0 : index
    %0 = vector.load %arg1[%c0, %c0_0] : memref<128x32xf32, #tpu.memory_space<vmem>>, vector<128x32xf32>
    %c0_1 = arith.constant 0 : index
    %c0_2 = arith.constant 0 : index
    %1 = vector.load %arg2[%c0_1, %c0_2] : memref<64x32xf32, #tpu.memory_space<vmem>>, vector<64x32xf32>
    %c0_3 = arith.constant 0 : index
    %c0_4 = arith.constant 0 : index
    %2 = vector.load %arg3[%c0_3, %c0_4] : memref<1x64xf32, #tpu.memory_space<vmem>>, vector<1x64xf32>
    %cst = arith.constant dense<0.000000e+00> : vector<128x64xf32>
    %3 = tpu.matmul %0, %1, %cst {dimension_numbers = #tpu.dot_dimension_numbers<[1], [1], [0], [0], [0, 0, 1, 0], [], []>} : vector<128x32xf32>, vector<64x32xf32>, vector<128x64xf32> -> vector<128x64xf32>
    %cst_5 = arith.constant 2.000000e+00 : f32
    %4 = vector.broadcast %cst_5 : f32 to vector<128x64xf32>
    %5 = arith.mulf %4, %3 : vector<128x64xf32>
    %6 = vector.broadcast %2 : vector<1x64xf32> to vector<128x64xf32>
    %7 = arith.subf %6, %5 : vector<128x64xf32>
    %cst_6 = arith.constant dense<0x7F800000> : vector<128xf32>
    %8 = vector.multi_reduction <minimumf>, %7, %cst_6 [1] : vector<128x64xf32> to vector<128xf32>
    %9 = vector.shape_cast %8 : vector<128xf32> to vector<128x1xf32>
    %10 = tpu.iota {dimensions = array<i32: 1>} : vector<128x64xi32>
    %11 = vector.broadcast %9 : vector<128x1xf32> to vector<128x64xf32>
    %12 = arith.cmpf oeq, %7, %11 : vector<128x64xf32>
    %c64_i32 = arith.constant 64 : i32
    %13 = vector.broadcast %c64_i32 : i32 to vector<128x64xi32>
    %14 = arith.select %12, %10, %13 : vector<128x64xi1>, vector<128x64xi32>
    %cst_7 = arith.constant dense<2147483647> : vector<128xi32>
    %15 = vector.multi_reduction <minsi>, %14, %cst_7 [1] : vector<128x64xi32> to vector<128xi32>
    %16 = vector.shape_cast %15 : vector<128xi32> to vector<128x1xi32>
    %17 = vector.broadcast %16 : vector<128x1xi32> to vector<128x64xi32>
    %18 = arith.cmpi eq, %10, %17 : vector<128x64xi32>
    %19 = arith.extui %18 : vector<128x64xi1> to vector<128x64xi32>
    %20 = arith.sitofp %19 : vector<128x64xi32> to vector<128x64xf32>
    %cst_8 = arith.constant dense<0.000000e+00> : vector<128x32xf32>
    %21 = tpu.matmul %20, %1, %cst_8 {dimension_numbers = #tpu.dot_dimension_numbers<[1], [0], [0], [1], [0, 0, 1, 1], [], []>} : vector<128x64xf32>, vector<64x32xf32>, vector<128x32xf32> -> vector<128x32xf32>
    %c0_9 = arith.constant 0 : index
    %c0_10 = arith.constant 0 : index
    %22 = vector.load %arg4[%c0_9, %c0_10] : memref<128x32xf32, #tpu.memory_space<vmem>>, vector<128x32xf32>
    tpu.vector_store %arg4[%c0_9, %c0_10], %21 {strides = array<i32>} : memref<128x32xf32, #tpu.memory_space<vmem>>, vector<128x32xf32>,
    %c0_11 = arith.constant 0 : index
    %c0_12 = arith.constant 0 : index
    %23 = vector.load %arg5[%c0_11, %c0_12] : memref<128x64xf32, #tpu.memory_space<vmem>>, vector<128x64xf32>
    tpu.vector_store %arg5[%c0_11, %c0_12], %20 {strides = array<i32>} : memref<128x64xf32, #tpu.memory_space<vmem>>, vector<128x64xf32>,
    %c0_13 = arith.constant 0 : index
    %c0_14 = arith.constant 0 : index
    %24 = vector.load %arg6[%c0_13, %c0_14] : memref<128x1xi32, #tpu.memory_space<vmem>>, vector<128x1xi32>
    tpu.vector_store %arg6[%c0_13, %c0_14], %16 {strides = array<i32>} : memref<128x1xi32, #tpu.memory_space<vmem>>, vector<128x1xi32>,
    %25 = tpu.iota {dimensions = array<i32: 0>} : vector<128x1xi32>
    %c128_i32 = arith.constant 128 : i32
    %26 = arith.muli %arg0, %c128_i32 : i32
    %27 = vector.broadcast %26 : i32 to vector<128x1xi32>
    %28 = arith.addi %25, %27 : vector<128x1xi32>
    %c128_i32_15 = arith.constant 128 : i32
    %29 = vector.broadcast %c128_i32_15 : i32 to vector<128x1xi32>
    %30 = arith.cmpi slt, %28, %29 : vector<128x1xi32>
    %31 = arith.extui %30 : vector<128x1xi1> to vector<128x1xi32>
    %32 = arith.sitofp %31 : vector<128x1xi32> to vector<128x1xf32>
    %33 = arith.subf %21, %0 : vector<128x32xf32>
    %34 = arith.mulf %33, %33 : vector<128x32xf32>
    %35 = vector.broadcast %32 : vector<128x1xf32> to vector<128x32xf32>
    %36 = arith.mulf %35, %34 : vector<128x32xf32>
    %37 = vector.shape_cast %36 : vector<128x32xf32> to vector<1x128x32xf32>
    %cst_16 = arith.constant dense<0.000000e+00> : vector<1xf32>
    %38 = vector.multi_reduction <add>, %37, %cst_16 [1, 2] : vector<1x128x32xf32> to vector<1xf32>
    %39 = vector.shape_cast %38 : vector<1xf32> to vector<1x1x1xf32>
    %40 = vector.extract %39[0, 0, 0] : f32 from vector<1x1x1xf32>
    %41 = vector.broadcast %40 : f32 to vector<1x1xf32>
    %42 = vector.broadcast %32 : vector<128x1xf32> to vector<128x64xf32>
    %43 = arith.mulf %20, %42 : vector<128x64xf32>
    %cst_17 = arith.constant dense<0.000000e+00> : vector<64xf32>
    %44 = vector.multi_reduction <add>, %43, %cst_17 [0] : vector<128x64xf32> to vector<64xf32>
    %45 = vector.shape_cast %44 : vector<64xf32> to vector<1x64xf32>
    %46 = vector.shape_cast %41 : vector<1x1xf32> to vector<1x1x1xf32>
    %47 = vector.shape_cast %46 : vector<1x1x1xf32> to vector<1x1x1xf32>
    %48 = vector.broadcast %47 : vector<1x1x1xf32> to vector<1x8x128xf32>
    %c0_18 = arith.constant 0 : index
    %c0_19 = arith.constant 0 : index
    %c0_20 = arith.constant 0 : index
    %49 = vector.load %arg7[%c0_18, %c0_19, %c0_20] : memref<1x8x128xf32, #tpu.memory_space<vmem>>, vector<1x8x128xf32>
    tpu.vector_store %arg7[%c0_18, %c0_19, %c0_20], %48 {strides = array<i32>} : memref<1x8x128xf32, #tpu.memory_space<vmem>>, vector<1x8x128xf32>,
    %50 = vector.shape_cast %45 : vector<1x64xf32> to vector<1x1x64xf32>
    %51 = vector.shape_cast %50 : vector<1x1x64xf32> to vector<1x1x64xf32>
    %52 = vector.broadcast %51 : vector<1x1x64xf32> to vector<1x8x64xf32>
    %c0_21 = arith.constant 0 : index
    %c0_22 = arith.constant 0 : index
    %c0_23 = arith.constant 0 : index
    %53 = vector.load %arg8[%c0_21, %c0_22, %c0_23] : memref<1x8x64xf32, #tpu.memory_space<vmem>>, vector<1x8x64xf32>
    tpu.vector_store %arg8[%c0_21, %c0_22, %c0_23], %52 {strides = array<i32>} : memref<1x8x64xf32, #tpu.memory_space<vmem>>, vector<1x8x64xf32>,
    return
  }
  func.func @transform_0(%arg0: i32) -> (i32, i32) {
    %c0_i32 = arith.constant 0 : i32
    %c0_i32_0 = arith.constant 0 : i32
    return %arg0, %c0_i32 : i32, i32
  }
  func.func @transform_1(%arg0: i32) -> (i32, i32) {
    %c0_i32 = arith.constant 0 : i32
    %c0_i32_0 = arith.constant 0 : i32
    %c0_i32_1 = arith.constant 0 : i32
    return %c0_i32, %c0_i32_0 : i32, i32
  }
  func.func @transform_2(%arg0: i32) -> (i32, i32) {
    %c0_i32 = arith.constant 0 : i32
    %c0_i32_0 = arith.constant 0 : i32
    %c0_i32_1 = arith.constant 0 : i32
    return %c0_i32, %c0_i32_0 : i32, i32
  }
  func.func @transform_3(%arg0: i32) -> (i32, i32) {
    %c0_i32 = arith.constant 0 : i32
    %c0_i32_0 = arith.constant 0 : i32
    return %arg0, %c0_i32 : i32, i32
  }
  func.func @transform_4(%arg0: i32) -> (i32, i32) {
    %c0_i32 = arith.constant 0 : i32
    %c0_i32_0 = arith.constant 0 : i32
    return %arg0, %c0_i32 : i32, i32
  }
  func.func @transform_5(%arg0: i32) -> (i32, i32) {
    %c0_i32 = arith.constant 0 : i32
    %c0_i32_0 = arith.constant 0 : i32
    return %arg0, %c0_i32 : i32, i32
  }
  func.func @transform_6(%arg0: i32) -> (i32, i32, i32) {
    %c0_i32 = arith.constant 0 : i32
    %c0_i32_0 = arith.constant 0 : i32
    %c0_i32_1 = arith.constant 0 : i32
    return %arg0, %c0_i32, %c0_i32_0 : i32, i32, i32
  }
  func.func @transform_7(%arg0: i32) -> (i32, i32, i32) {
    %c0_i32 = arith.constant 0 : i32
    %c0_i32_0 = arith.constant 0 : i32
    %c0_i32_1 = arith.constant 0 : i32
    return %arg0, %c0_i32, %c0_i32_0 : i32, i32, i32
  }
}

</mosaic_0001>

<bundles_post_ra>
// kernel: tpu_custom_call.1
= control target key start
LH: loop header
LB: loop body
LE: loop exit
PB: predicated region body
PF: predicated region fallthrough
CT: control target
= control target key end

     0   :  { %13 = vsyncpa [#allocation3], 0  ;;  %vm46_vm0 = vcmask 261120   ;;  %s2233_s0 = inlined_call_operand.vmem [shape: f32[128,32], index: 0, kind: input, shape index: {}]   ;;  %s2234_s1 = inlined_call_operand.vmem [shape: f32[64,32], index: 1, kind: input, shape index: {}]   ;;  %s2235_s2 = inlined_call_operand.vmem [shape: f32[1,64], index: 2, kind: input, shape index: {}]   ;;  %s2236_s3 = inlined_call_operand.vmem [shape: f32[128,32], index: 3, kind: output, shape index: {0}]   ;;  %s2237_s4 = inlined_call_operand.vmem [shape: f32[128,64], index: 4, kind: output, shape index: {1}]   ;;  %s2238_s5 = inlined_call_operand.vmem [shape: s32[128,1], index: 5, kind: output, shape index: {2}]   ;;  %s2239_s6 = inlined_call_operand.hbm [shape: f32[1,8,128], index: 6, kind: output, shape index: {3}]   ;;  %s2240_s7 = inlined_call_operand.hbm [shape: f32[1,8,64], index: 7, kind: output, shape index: {4}]  }
   0x1   :  { %v44_v0 = vld [vmem:[%s2234_s1 + $0x38] sm:$0xff]  ;;  %v43_v1 = vld [vmem:[%s2234_s1 + $0x30] sm:$0xff]  ;;  %v21_v2 = vld [vmem:[%s2233_s0] sm:$0xff] }
   0x2   :  { %1287 = vmatprep.subr.msk.mxu0 %vm46_vm0, %v44_v0  ;;  %1327 = vmatprep.subr.mxu1 %v44_v0  ;;  %v42_v3 = vld [vmem:[%s2234_s1 + $0x28] sm:$0xff]  ;;  %v41_v4 = vld [vmem:[%s2234_s1 + $0x20] sm:$0xff] }
   0x3   :  { %1288 = vmatpush3.xpose.msk.msra.mxu0 %vm46_vm0, %v44_v0  ;;  %1328 = vmatpush3.msra.mxu1 %v44_v0 }
   0x4   :  { %1289 = vmatprep.subr.msk.mxu0 %vm46_vm0, %v43_v1  ;;  %1303 = vmatprep.mubr.msk.f32.mxu0 %vm46_vm0, %v21_v2 }
   0x5   :  { %1329 = vmatprep.subr.mxu1 %v43_v1 }
   0x6   :  { %1330 = vmatpush3.msra.mxu1 %v43_v1 }
   0x7   :  { %1290 = vmatpush3.xpose.msk.msra.mxu0 %vm46_vm0, %v43_v1  ;;  %1331 = vmatprep.subr.mxu1 %v42_v3 }
   0x8   :  { %1291 = vmatprep.subr.msk.mxu0 %vm46_vm0, %v42_v3  ;;  %1332 = vmatpush3.msra.mxu1 %v42_v3 }
   0x9   :  { %1333 = vmatprep.subr.mxu1 %v41_v4 }
   0xa   :  { %14 = vsyncpa [#allocation5], 0  ;;  %v40_v5 = vld [vmem:[%s2234_s1 + $0x18] sm:$0xff]  ;;  %1334 = vmatpush3.msra.mxu1 %v41_v4  ;;  %v39_v6 = vld [vmem:[%s2234_s1 + $0x10] sm:$0xff]  ;;  %vm302_vm1 = vcmask 523264   ;;  %s1433_s23 = smov [#allocation4]  }
   0xb   :  { %1292 = vmatpush3.xpose.msk.msra.mxu0 %vm46_vm0, %v42_v3  ;;  %1335 = vmatprep.subr.mxu1 %v40_v5  ;;  %v38_v7 = vld [vmem:[%s2234_s1 + $0x8] sm:$0xff]  ;;  %v37_v8 = vld [vmem:[%s2234_s1] sm:$0xff]  ;;  %v23_v10 = vld [vmem:[%s2233_s0 + $0x10] sm:$0xff] }
   0xc   :  { %1293 = vmatprep.subr.msk.mxu0 %vm46_vm0, %v41_v4  ;;  %1336 = vmatpush3.msra.mxu1 %v40_v5  ;;  %v22_v9 = vld [vmem:[%s2233_s0 + $0x8] sm:$0xff]  ;;  %v24_v11 = vld [vmem:[%s2233_s0 + $0x18] sm:$0xff]  ;;  %v25_v12 = vld [vmem:[%s2233_s0 + $0x20] sm:$0xff] }
   0xd   :  { %1337 = vmatprep.subr.mxu1 %v39_v6  ;;  %v26_v13 = vld [vmem:[%s2233_s0 + $0x28] sm:$0xff]  ;;  %v27_v14 = vld [vmem:[%s2233_s0 + $0x30] sm:$0xff]  ;;  %v28_v15 = vld [vmem:[%s2233_s0 + $0x38] sm:$0xff] }
   0xe   :  { %1338 = vmatpush3.msra.mxu1 %v39_v6  ;;  %v29_v16 = vld [vmem:[%s2233_s0 + $0x40] sm:$0xff]  ;;  %v30_v17 = vld [vmem:[%s2233_s0 + $0x48] sm:$0xff]  ;;  %v31_v18 = vld [vmem:[%s2233_s0 + $0x50] sm:$0xff] }
   0xf   :  { %1294 = vmatpush3.xpose.msk.msra.mxu0 %vm46_vm0, %v41_v4  ;;  %1339 = vmatprep.subr.mxu1 %v38_v7  ;;  %v32_v19 = vld [vmem:[%s2233_s0 + $0x58] sm:$0xff]  ;;  %v33_v20 = vld [vmem:[%s2233_s0 + $0x60] sm:$0xff]  ;;  %v34_v21 = vld [vmem:[%s2233_s0 + $0x68] sm:$0xff] }
  0x10   :  { %1295 = vmatprep.subr.msk.mxu0 %vm46_vm0, %v40_v5  ;;  %1340 = vmatpush3.msra.mxu1 %v38_v7  ;;  %v35_v22 = vld [vmem:[%s2233_s0 + $0x70] sm:$0xff]  ;;  %v36_v23 = vld [vmem:[%s2233_s0 + $0x78] sm:$0xff]  ;;  %v1582_v29 = vld [vmem:[%s2235_s2] ss:$0 sm:$0xff] }
  0x11   :  { %1341 = vmatprep.subr.mxu1 %v37_v8 }
  0x12   :  { %1342 = vmatpush3.msra.mxu1 %v37_v8 }
  0x13   :  { %1296 = vmatpush3.xpose.msk.msra.mxu0 %vm46_vm0, %v40_v5 }
  0x14   :  { %1297 = vmatprep.subr.msk.mxu0 %vm46_vm0, %v39_v6 }
  0x17   :  { %1298 = vmatpush3.xpose.msk.msra.mxu0 %vm46_vm0, %v39_v6 }
  0x18   :  { %1299 = vmatprep.subr.msk.mxu0 %vm46_vm0, %v38_v7 }
  0x1b   :  { %1300 = vmatpush3.xpose.msk.msra.mxu0 %vm46_vm0, %v38_v7 }
  0x1c   :  { %1301 = vmatprep.subr.msk.mxu0 %vm46_vm0, %v37_v8 }
  0x1f   :  { %1302 = vmatpush3.xpose.msk.msra.mxu0 %vm46_vm0, %v37_v8 }
  0x22   :  { %1304 = vmatmul.mubr.msk.f32.vlgmr.msra.gmra.mxu0 %vm46_vm0, %v22_v9 }
  0x23   :  { %1306 = vmatprep.mubr.msk.f32.mxu0 %vm46_vm0, %v23_v10 }
  0x26   :  { %1307 = vmatmul.mubr.msk.f32.gmra.mxu0 %vm46_vm0, %v24_v11 }
  0x27   :  { %1309 = vmatprep.mubr.msk.f32.mxu0 %vm46_vm0, %v25_v12 }
  0x2a   :  { %1310 = vmatmul.mubr.msk.f32.gmra.mxu0 %vm46_vm0, %v26_v13 }
  0x2b   :  { %1312 = vmatprep.mubr.msk.f32.mxu0 %vm46_vm0, %v27_v14 }
  0x2e   :  { %1313 = vmatmul.mubr.msk.f32.gmra.mxu0 %vm46_vm0, %v28_v15 }
  0x2f   :  { %1315 = vmatprep.mubr.msk.f32.mxu0 %vm46_vm0, %v29_v16 }
  0x32   :  { %1316 = vmatmul.mubr.msk.f32.gmra.mxu0 %vm46_vm0, %v30_v17 }
  0x33   :  { %1318 = vmatprep.mubr.msk.f32.mxu0 %vm46_vm0, %v31_v18 }
  0x36   :  { %1319 = vmatmul.mubr.msk.f32.gmra.mxu0 %vm46_vm0, %v32_v19 }
  0x37   :  { %1321 = vmatprep.mubr.msk.f32.mxu0 %vm46_vm0, %v33_v20 }
  0x3a   :  { %1322 = vmatmul.mubr.msk.f32.gmra.mxu0 %vm46_vm0, %v34_v21 }
  0x3b   :  { %1324 = vmatprep.mubr.msk.f32.mxu0 %vm46_vm0, %v35_v22 }
  0x3e   :  { %1325 = vmatmul.mubr.msk.f32.gmra.mxu0 %vm46_vm0, %v36_v23 }
  0xe2   :  { %v1305_v24 = vpop.f32.mrf.mxu0 }
  0xe3   :  { %v265_v26 = vmul.f32 2.0, %v1305_v24 }
  0xe4   :  { %v185_v25 = vpop.f32.mrf.mxu0 }
  0xe5   :  { %v264_v27 = vmul.f32 2.0, %v185_v25  ;;  %v1590_v35 = vsub.f32 %v1582_v29, %v265_v26  ;;  %v351_v25 = vlaneseq }
  0xe6   :  { %v1308_v28 = vpop.f32.mrf.mxu0 }
  0xe7   :  { %v1585_v30 = vsub.f32 %v1582_v29, %v264_v27  ;;  %v267_v32 = vmul.f32 2.0, %v1308_v28  ;;  %v306_v41 = vsel %vm302_vm1, %v1590_v35, inf  ;;  %v1664_v26 = vand.u32 127, %v351_v25 }
  0xe8   :  { %v195_v31 = vpop.f32.mrf.mxu0 }
  0xe9   :  { %v266_v33 = vmul.f32 2.0, %v195_v31  ;;  %v303_v34 = vsel %vm302_vm1, %v1585_v30, inf  ;;  %v1600_v43 = vsub.f32 %v1582_v29, %v267_v32 }
  0xea   :  { %304 = vmin.xlane.f32.xlu0 %v303_v34  ;;  %v1311_v36 = vpop.f32.mrf.mxu0 }
  0xeb   :  { %v1593_v37 = vsub.f32 %v1582_v29, %v266_v33  ;;  %v269_v38 = vmul.f32 2.0, %v1311_v36  ;;  %v312_v50 = vsel %vm302_vm1, %v1600_v43, inf }
  0xec   :  { %v205_v39 = vpop.f32.mrf.mxu0 }
  0xed   :  { %v268_v40 = vmul.f32 2.0, %v205_v39  ;;  %v309_v42 = vsel %vm302_vm1, %v1593_v37, inf  ;;  %v1606_v47 = vsub.f32 %v1582_v29, %v269_v38 }
  0xee   :  { %307 = vmin.xlane.f32.xlu0 %v306_v41  ;;  %310 = vmin.xlane.f32.xlu1 %v309_v42  ;;  %v1314_v44 = vpop.f32.mrf.mxu0 }
  0xef   :  { %v1603_v45 = vsub.f32 %v1582_v29, %v268_v40  ;;  %v271_v48 = vmul.f32 2.0, %v1314_v44  ;;  %v318_v55 = vsel %vm302_vm1, %v1606_v47, inf }
  0xf0   :  { %v215_v46 = vpop.f32.mrf.mxu0 }
  0xf1   :  { %v270_v49 = vmul.f32 2.0, %v215_v46  ;;  %v315_v51 = vsel %vm302_vm1, %v1603_v45, inf  ;;  %v1620_v59 = vsub.f32 %v1582_v29, %v271_v48 }
  0xf2   :  { %313 = vmin.xlane.f32.xlu1 %v312_v50  ;;  %316 = vmin.xlane.f32.xlu0 %v315_v51  ;;  %v1317_v52 = vpop.f32.mrf.mxu0 }
  0xf3   :  { %v1613_v53 = vsub.f32 %v1582_v29, %v270_v49  ;;  %v273_v56 = vmul.f32 2.0, %v1317_v52  ;;  %v324_v1 = vsel %vm302_vm1, %v1620_v59, inf }
  0xf4   :  { %v225_v54 = vpop.f32.mrf.mxu0 }
  0xf5   :  { %v272_v57 = vmul.f32 2.0, %v225_v54  ;;  %v321_v58 = vsel %vm302_vm1, %v1613_v53, inf  ;;  %v1630_v3 = vsub.f32 %v1582_v29, %v273_v56 }
  0xf6   :  { %319 = vmin.xlane.f32.xlu1 %v318_v55  ;;  %322 = vmin.xlane.f32.xlu0 %v321_v58  ;;  %v1320_v60 = vpop.f32.mrf.mxu0 }
  0xf7   :  { %v1623_v61 = vsub.f32 %v1582_v29, %v272_v57  ;;  %v275_v62 = vmul.f32 2.0, %v1320_v60  ;;  %v330_v10 = vsel %vm302_vm1, %v1630_v3, inf }
  0xf8   :  { %v235_v63 = vpop.f32.mrf.mxu0 }
  0xf9   :  { %v274_v0 = vmul.f32 2.0, %v235_v63  ;;  %v327_v2 = vsel %vm302_vm1, %v1623_v61, inf  ;;  %v1636_v7 = vsub.f32 %v1582_v29, %v275_v62 }
  0xfa   :  { %325 = vmin.xlane.f32.xlu1 %v324_v1  ;;  %328 = vmin.xlane.f32.xlu0 %v327_v2  ;;  %v1323_v4 = vpop.f32.mrf.mxu0 }
  0xfb   :  { %v1633_v5 = vsub.f32 %v1582_v29, %v274_v0  ;;  %v277_v8 = vmul.f32 2.0, %v1323_v4  ;;  %v336_v15 = vsel %vm302_vm1, %v1636_v7, inf }
  0xfc   :  { %v245_v6 = vpop.f32.mrf.mxu0 }
  0xfd   :  { %v276_v9 = vmul.f32 2.0, %v245_v6  ;;  %v333_v11 = vsel %vm302_vm1, %v1633_v5, inf  ;;  %v1650_v19 = vsub.f32 %v1582_v29, %v277_v8 }
  0xfe   :  { %331 = vmin.xlane.f32.xlu1 %v330_v10  ;;  %334 = vmin.xlane.f32.xlu0 %v333_v11  ;;  %v1326_v12 = vpop.f32.mrf.mxu0 }
  0xff   :  { %v1643_v13 = vsub.f32 %v1582_v29, %v276_v9  ;;  %v279_v16 = vmul.f32 2.0, %v1326_v12  ;;  %v342_v21 = vsel %vm302_vm1, %v1650_v19, inf }
 0x100   :  { %v255_v14 = vpop.f32.mrf.mxu0 }
 0x101   :  { %v278_v17 = vmul.f32 2.0, %v255_v14  ;;  %v339_v18 = vsel %vm302_vm1, %v1643_v13, inf  ;;  %v1660_v23 = vsub.f32 %v1582_v29, %v279_v16 }
 0x102   :  { %337 = vmin.xlane.f32.xlu1 %v336_v15  ;;  %340 = vmin.xlane.f32.xlu0 %v339_v18 }
 0x103   :  { %v1653_v20 = vsub.f32 %v1582_v29, %v278_v17  ;;  %v348_v24 = vsel %vm302_vm1, %v1660_v23, inf }
 0x105   :  { %v345_v22 = vsel %vm302_vm1, %v1653_v20, inf }
 0x106   :  { %343 = vmin.xlane.f32.xlu1 %v342_v21  ;;  %346 = vmin.xlane.f32.xlu0 %v345_v22 }
 0x10a   :  { %349 = vmin.xlane.f32.xlu1 %v348_v24 }
 0x173   :  { %v305_v27 = vpop.xlane.xlu0 %304 }
 0x174   :  { %vm353_vm2 = vcmp.eq.f32.partialorder %v1585_v30, %v305_v27 }
 0x175   :  { %v369_v28 = vsel %vm353_vm2, %v1664_v26, 64 }
 0x176   :  { %v1669_v31 = vsel %vm302_vm1, %v369_v28, 2147483647 }
 0x177   :  { %v308_v32 = vpop.xlane.xlu0 %307  ;;  %v311_v29 = vpop.xlane.xlu1 %310  ;;  %v387_v33 = vshra.s32 %v1669_v31, 16 }
 0x178   :  { %vm354_vm3 = vcmp.eq.f32.partialorder %v1590_v35, %v308_v32  ;;  %vm355_vm4 = vcmp.eq.f32.partialorder %v1593_v37, %v311_v29 }
 0x179   :  { %v370_v34 = vsel %vm354_vm3, %v1664_v26, 64  ;;  %v371_v36 = vsel %vm355_vm4, %v1664_v26, 64  ;;  %v1676_v38 = vcvt.s32.f32 %v387_v33 }
 0x17a   :  { %v1679_v30 = vsel %vm302_vm1, %v370_v34, 2147483647  ;;  %v1682_v39 = vsel %vm302_vm1, %v371_v36, 2147483647 }
 0x17b   :  { %v314_v40 = vpop.xlane.xlu1 %313  ;;  %v317_v41 = vpop.xlane.xlu0 %316  ;;  %390 = vmin.xlane.f32.xlu0 %v1676_v38  ;;  %v402_v35 = vshra.s32 %v1679_v30, 16  ;;  %v417_v37 = vshra.s32 %v1682_v39, 16 }
 0x17c   :  { %vm356_vm5 = vcmp.eq.f32.partialorder %v1600_v43, %v314_v40  ;;  %vm357_vm6 = vcmp.eq.f32.partialorder %v1603_v45, %v317_v41 }
 0x17d   :  { %v372_v42 = vsel %vm356_vm5, %v1664_v26, 64  ;;  %v373_v44 = vsel %vm357_vm6, %v1664_v26, 64  ;;  %v1691_v46 = vcvt.s32.f32 %v402_v35  ;;  %v1693_v48 = vcvt.s32.f32 %v417_v37 }
 0x17e   :  { %v1696_v49 = vsel %vm302_vm1, %v372_v42, 2147483647  ;;  %v1699_v50 = vsel %vm302_vm1, %v373_v44, 2147483647 }
 0x17f   :  { %v320_v51 = vpop.xlane.xlu1 %319  ;;  %v323_v52 = vpop.xlane.xlu0 %322  ;;  %405 = vmin.xlane.f32.xlu1 %v1691_v46  ;;  %420 = vmin.xlane.f32.xlu0 %v1693_v48  ;;  %v432_v43 = vshra.s32 %v1696_v49, 16  ;;  %v447_v45 = vshra.s32 %v1699_v50, 16 }
 0x180   :  { %vm358_vm7 = vcmp.eq.f32.partialorder %v1606_v47, %v320_v51  ;;  %vm359_vm8 = vcmp.eq.f32.partialorder %v1613_v53, %v323_v52 }
 0x181   :  { %v374_v54 = vsel %vm358_vm7, %v1664_v26, 64  ;;  %v375_v55 = vsel %vm359_vm8, %v1664_v26, 64  ;;  %v1709_v56 = vcvt.s32.f32 %v432_v43  ;;  %v1711_v57 = vcvt.s32.f32 %v447_v45 }
 0x182   :  { %v1714_v58 = vsel %vm302_vm1, %v374_v54, 2147483647  ;;  %v1717_v60 = vsel %vm302_vm1, %v375_v55, 2147483647 }
 0x183   :  { %v326_v62 = vpop.xlane.xlu1 %325  ;;  %v329_v63 = vpop.xlane.xlu0 %328  ;;  %435 = vmin.xlane.f32.xlu1 %v1709_v56  ;;  %450 = vmin.xlane.f32.xlu0 %v1711_v57  ;;  %v462_v47 = vshra.s32 %v1714_v58, 16  ;;  %v477_v53 = vshra.s32 %v1717_v60, 16 }
 0x184   :  { %vm360_vm9 = vcmp.eq.f32.partialorder %v1620_v59, %v326_v62  ;;  %vm361_vm10 = vcmp.eq.f32.partialorder %v1623_v61, %v329_v63  ;;  %v401_v63 = vand.u32 65535, %v1679_v30 }
 0x185   :  { %v376_v0 = vsel %vm360_vm9, %v1664_v26, 64  ;;  %v377_v1 = vsel %vm361_vm10, %v1664_v26, 64  ;;  %v1727_v2 = vcvt.s32.f32 %v462_v47  ;;  %v1729_v4 = vcvt.s32.f32 %v477_v53 }
 0x186   :  { %v1732_v6 = vsel %vm302_vm1, %v376_v0, 2147483647  ;;  %v1735_v8 = vsel %vm302_vm1, %v377_v1, 2147483647  ;;  %v416_v47 = vand.u32 65535, %v1682_v39 }
 0x187   :  { %v332_v9 = vpop.xlane.xlu1 %331  ;;  %v335_v10 = vpop.xlane.xlu0 %334  ;;  %465 = vmin.xlane.f32.xlu1 %v1727_v2  ;;  %480 = vmin.xlane.f32.xlu0 %v1729_v4  ;;  %v492_v59 = vshra.s32 %v1732_v6, 16  ;;  %v507_v61 = vshra.s32 %v1735_v8, 16 }
 0x188   :  { %vm362_vm11 = vcmp.eq.f32.partialorder %v1630_v3, %v332_v9  ;;  %vm363_vm12 = vcmp.eq.f32.partialorder %v1633_v5, %v335_v10  ;;  %v403_v9 = vcvt.s32.f32 %v401_v63  ;;  %v418_v10 = vcvt.s32.f32 %v416_v47 }
 0x189   :  { %v378_v11 = vsel %vm362_vm11, %v1664_v26, 64  ;;  %v379_v12 = vsel %vm363_vm12, %v1664_v26, 64  ;;  %v1745_v14 = vcvt.s32.f32 %v492_v59  ;;  %v1747_v15 = vcvt.s32.f32 %v507_v61 }
 0x18a   :  { %v1750_v16 = vsel %vm302_vm1, %v378_v11, 2147483647  ;;  %v1753_v17 = vsel %vm302_vm1, %v379_v12, 2147483647  ;;  %v446_v59 = vand.u32 65535, %v1699_v50  ;;  %v476_v50 = vand.u32 65535, %v1717_v60 }
 0x18b   :  { %v338_v18 = vpop.xlane.xlu1 %337  ;;  %v341_v21 = vpop.xlane.xlu0 %340  ;;  %495 = vmin.xlane.f32.xlu1 %v1745_v14  ;;  %510 = vmin.xlane.f32.xlu0 %v1747_v15  ;;  %v522_v3 = vshra.s32 %v1750_v16, 16  ;;  %v537_v5 = vshra.s32 %v1753_v17, 16  ;;  %v506_v60 = vand.u32 65535, %v1735_v8  ;;  %v536_v8 = vand.u32 65535, %v1753_v17 }
 0x18c   :  { %vm364_vm13 = vcmp.eq.f32.partialorder %v1636_v7, %v338_v18  ;;  %vm365_vm14 = vcmp.eq.f32.partialorder %v1643_v13, %v341_v21  ;;  %v448_v12 = vcvt.s32.f32 %v446_v59 }
 0x18d   :  { %v380_v22 = vsel %vm364_vm13, %v1664_v26, 64  ;;  %v381_v24 = vsel %vm365_vm14, %v1664_v26, 64  ;;  %v1763_v25 = vcvt.s32.f32 %v522_v3  ;;  %v1765_v27 = vcvt.s32.f32 %v537_v5 }
 0x18e   :  { %v1768_v28 = vsel %vm302_vm1, %v380_v22, 2147483647  ;;  %v1771_v32 = vsel %vm302_vm1, %v381_v24, 2147483647  ;;  %v478_v5 = vcvt.s32.f32 %v476_v50  ;;  %v1432_v50 = vmov 0.0  }
 0x18f   :  { %v344_v29 = vpop.xlane.xlu1 %343  ;;  %525 = vmin.xlane.f32.xlu1 %v1763_v25  ;;  %540 = vmin.xlane.f32.xlu0 %v1765_v27  ;;  %v347_v7 = vpop.xlane.xlu0 %346  ;;  %v552_v13 = vshra.s32 %v1768_v28, 16  ;;  %v567_v33 = vshra.s32 %v1771_v32, 16  ;;  %v566_v17 = vand.u32 65535, %v1771_v32 }
 0x190   :  { %vm366_vm15 = vcmp.eq.f32.partialorder %v1650_v19, %v344_v29  ;;  %vm367_vm2 = vcmp.eq.f32.partialorder %v1653_v20, %v347_v7  ;;  %v508_v7 = vcvt.s32.f32 %v506_v60 }
 0x191   :  { %v382_v34 = vsel %vm366_vm15, %v1664_v26, 64  ;;  %v383_v36 = vsel %vm367_vm2, %v1664_v26, 64  ;;  %v1781_v40 = vcvt.s32.f32 %v552_v13  ;;  %v1783_v41 = vcvt.s32.f32 %v567_v33 }
 0x192   :  { %v1786_v35 = vsel %vm302_vm1, %v382_v34, 2147483647  ;;  %v1789_v37 = vsel %vm302_vm1, %v383_v36, 2147483647  ;;  %v538_v36 = vcvt.s32.f32 %v536_v8 }
 0x193   :  { %555 = vmin.xlane.f32.xlu1 %v1781_v40  ;;  %v350_v42 = vpop.xlane.xlu1 %349  ;;  %570 = vmin.xlane.f32.xlu0 %v1783_v41  ;;  %v582_v19 = vshra.s32 %v1786_v35, 16  ;;  %v597_v20 = vshra.s32 %v1789_v37, 16  ;;  %v596_v32 = vand.u32 65535, %v1789_v37 }
 0x194   :  { %vm368_vm3 = vcmp.eq.f32.partialorder %v1660_v23, %v350_v42  ;;  %v386_v23 = vand.u32 65535, %v1669_v31  ;;  %v431_v31 = vand.u32 65535, %v1696_v49  ;;  %v461_v49 = vand.u32 65535, %v1714_v58 }
 0x195   :  { %v384_v44 = vsel %vm368_vm3, %v1664_v26, 64  ;;  %v1797_v51 = vcvt.s32.f32 %v582_v19  ;;  %v1799_v52 = vcvt.s32.f32 %v597_v20  ;;  %v491_v58 = vand.u32 65535, %v1732_v6 }
 0x196   :  { %v1802_v43 = vsel %vm302_vm1, %v384_v44, 2147483647  ;;  %v388_v62 = vcvt.s32.f32 %v386_v23  ;;  %v433_v11 = vcvt.s32.f32 %v431_v31  ;;  %v463_v3 = vcvt.s32.f32 %v461_v49 }
 0x197   :  { %585 = vmin.xlane.f32.xlu1 %v1797_v51  ;;  %600 = vmin.xlane.f32.xlu0 %v1799_v52  ;;  %v612_v45 = vshra.s32 %v1802_v43, 16  ;;  %v493_v29 = vcvt.s32.f32 %v491_v58  ;;  %v521_v6 = vand.u32 65535, %v1750_v16  ;;  %v551_v16 = vand.u32 65535, %v1768_v28 }
 0x198   :  { %v568_v44 = vcvt.s32.f32 %v566_v17  ;;  %v581_v28 = vand.u32 65535, %v1786_v35  ;;  %v598_v63 = vcvt.s32.f32 %v596_v32  ;;  %v611_v35 = vand.u32 65535, %v1802_v43 }
 0x199   :  { %v1807_v54 = vcvt.s32.f32 %v612_v45  ;;  %v523_v34 = vcvt.s32.f32 %v521_v6  ;;  %v553_v20 = vcvt.s32.f32 %v551_v16 }
 0x19a   :  { %v613_v47 = vcvt.s32.f32 %v611_v35 }
 0x19b   :  { %615 = vmin.xlane.f32.xlu1 %v1807_v54 }
 0x204   :  { %v1811_v55 = vpop.xlane.xlu0 %390 }
 0x205   :  { %vm392_vm4 = vcmp.eq.f32.partialorder %v1676_v38, %v1811_v55  ;;  %v397_v43 = vcvt.f32.s32 %v1811_v55 }
 0x206   :  { %v393_v53 = vsel %vm392_vm4, %v388_v62, inf  ;;  %v583_v62 = vcvt.s32.f32 %v581_v28 }
 0x207   :  { %394 = vmin.xlane.f32.xlu0 %v393_v53 }
 0x208   :  { %v1817_v0 = vpop.xlane.xlu1 %405  ;;  %v1819_v1 = vpop.xlane.xlu0 %420 }
 0x209   :  { %vm407_vm5 = vcmp.eq.f32.partialorder %v1691_v46, %v1817_v0  ;;  %vm422_vm6 = vcmp.eq.f32.partialorder %v1693_v48, %v1819_v1 }
 0x20a   :  { %v408_v30 = vsel %vm407_vm5, %v403_v9, inf  ;;  %v423_v38 = vsel %vm422_vm6, %v418_v10, inf  ;;  %v412_v9 = vcvt.f32.s32 %v1817_v0  ;;  %v398_v10 = vshll.u32 %v397_v43, 16 }
 0x20b   :  { %409 = vmin.xlane.f32.xlu1 %v408_v30  ;;  %424 = vmin.xlane.f32.xlu0 %v423_v38  ;;  %vm898_vm6 = vcmask 7168  }
 0x20c   :  { %v1827_v39 = vpop.xlane.xlu1 %435  ;;  %v1829_v61 = vpop.xlane.xlu0 %450  ;;  %v413_v30 = vshll.u32 %v412_v9, 16 }
 0x20d   :  { %vm437_vm7 = vcmp.eq.f32.partialorder %v1709_v56, %v1827_v39  ;;  %vm452_vm8 = vcmp.eq.f32.partialorder %v1711_v57, %v1829_v61  ;;  %v442_v38 = vcvt.f32.s32 %v1827_v39 }
 0x20e   :  { %v438_v46 = vsel %vm437_vm7, %v433_v11, inf  ;;  %v453_v48 = vsel %vm452_vm8, %v448_v12, inf  ;;  %v457_v11 = vcvt.f32.s32 %v1829_v61 }
 0x20f   :  { %439 = vmin.xlane.f32.xlu1 %v438_v46  ;;  %454 = vmin.xlane.f32.xlu0 %v453_v48  ;;  %v443_v61 = vshll.u32 %v442_v38, 16 }
 0x210   :  { %v1837_v18 = vpop.xlane.xlu1 %465  ;;  %v1839_v21 = vpop.xlane.xlu0 %480 }
 0x211   :  { %vm467_vm9 = vcmp.eq.f32.partialorder %v1727_v2, %v1837_v18  ;;  %vm482_vm10 = vcmp.eq.f32.partialorder %v1729_v4, %v1839_v21 }
 0x212   :  { %v468_v56 = vsel %vm467_vm9, %v463_v3, inf  ;;  %v483_v57 = vsel %vm482_vm10, %v478_v5, inf  ;;  %v458_v3 = vshll.u32 %v457_v11, 16  ;;  %v487_v5 = vcvt.f32.s32 %v1839_v21 }
 0x213   :  { %469 = vmin.xlane.f32.xlu1 %v468_v56  ;;  %484 = vmin.xlane.f32.xlu0 %v483_v57 }
 0x214   :  { %v1847_v22 = vpop.xlane.xlu1 %495  ;;  %v1849_v24 = vpop.xlane.xlu0 %510 }
 0x215   :  { %vm497_vm11 = vcmp.eq.f32.partialorder %v1745_v14, %v1847_v22  ;;  %vm512_vm12 = vcmp.eq.f32.partialorder %v1747_v15, %v1849_v24  ;;  %v502_v21 = vcvt.f32.s32 %v1847_v22  ;;  %v488_v22 = vshll.u32 %v487_v5, 16 }
 0x216   :  { %v498_v2 = vsel %vm497_vm11, %v493_v29, inf  ;;  %v513_v4 = vsel %vm512_vm12, %v508_v7, inf }
 0x217   :  { %499 = vmin.xlane.f32.xlu1 %v498_v2  ;;  %514 = vmin.xlane.f32.xlu0 %v513_v4 }
 0x218   :  { %v1857_v13 = vpop.xlane.xlu1 %525  ;;  %v1859_v33 = vpop.xlane.xlu0 %540 }
 0x219   :  { %vm527_vm13 = vcmp.eq.f32.partialorder %v1763_v25, %v1857_v13  ;;  %vm542_vm14 = vcmp.eq.f32.partialorder %v1765_v27, %v1859_v33 }
 0x21a   :  { %v528_v14 = vsel %vm527_vm13, %v523_v34, inf  ;;  %v543_v15 = vsel %vm542_vm14, %v538_v36, inf  ;;  %v517_v34 = vcvt.f32.s32 %v1849_v24  ;;  %v503_v24 = vshll.u32 %v502_v21, 16 }
 0x21b   :  { %529 = vmin.xlane.f32.xlu1 %v528_v14  ;;  %544 = vmin.xlane.f32.xlu0 %v543_v15 }
 0x21c   :  { %v1867_v42 = vpop.xlane.xlu1 %555  ;;  %v1869_v19 = vpop.xlane.xlu0 %570  ;;  %v518_v35 = vshll.u32 %v517_v34, 16 }
 0x21d   :  { %vm557_vm15 = vcmp.eq.f32.partialorder %v1781_v40, %v1867_v42  ;;  %vm572_vm2 = vcmp.eq.f32.partialorder %v1783_v41, %v1869_v19  ;;  %v577_v11 = vcvt.f32.s32 %v1869_v19 }
 0x21e   :  { %v558_v25 = vsel %vm557_vm15, %v553_v20, inf  ;;  %v573_v27 = vsel %vm572_vm2, %v568_v44, inf }
 0x21f   :  { %559 = vmin.xlane.f32.xlu1 %v558_v25  ;;  %574 = vmin.xlane.f32.xlu0 %v573_v27  ;;  %v532_v25 = vcvt.f32.s32 %v1857_v13 }
 0x220   :  { %v1877_v45 = vpop.xlane.xlu1 %585  ;;  %v1879_v23 = vpop.xlane.xlu0 %600 }
 0x221   :  { %vm587_vm3 = vcmp.eq.f32.partialorder %v1797_v51, %v1877_v45  ;;  %vm602_vm4 = vcmp.eq.f32.partialorder %v1799_v52, %v1879_v23  ;;  %v427_v52 = vcvt.f32.s32 %v1819_v1  ;;  %v472_v1 = vcvt.f32.s32 %v1837_v18 }
 0x222   :  { %v588_v40 = vsel %vm587_vm3, %v583_v62, inf  ;;  %v603_v41 = vsel %vm602_vm4, %v598_v63, inf }
 0x223   :  { %589 = vmin.xlane.f32.xlu1 %v588_v40  ;;  %604 = vmin.xlane.f32.xlu0 %v603_v41  ;;  %v428_v49 = vshll.u32 %v427_v52, 16  ;;  %v473_v57 = vshll.u32 %v472_v1, 16  ;;  %v547_v40 = vcvt.f32.s32 %v1859_v33  ;;  %v562_v33 = vcvt.f32.s32 %v1867_v42 }
 0x224   :  { %v1886_v37 = vpop.xlane.xlu1 %615 }
 0x225   :  { %vm617_vm5 = vcmp.eq.f32.partialorder %v1807_v54, %v1886_v37  ;;  %v548_v42 = vshll.u32 %v547_v40, 16  ;;  %v563_v19 = vshll.u32 %v562_v33, 16 }
 0x226   :  { %v618_v53 = vsel %vm617_vm5, %v613_v47, inf }
 0x227   :  { %619 = vmin.xlane.f32.xlu1 %v618_v53 }
 0x290   :  { %v395_v51 = vpop.xlane.xlu0 %394 }
 0x291   :  { %v396_v31 = vcvt.f32.s32 %v395_v51 }
 0x293   :  { %v399_v59 = vadd.s32 %v398_v10, %v396_v31  ;;  %v533_v31 = vshll.u32 %v532_v25, 16 }
 0x294   :  { %v410_v12 = vpop.xlane.xlu1 %409  ;;  %v425_v54 = vpop.xlane.xlu0 %424 }
 0x295   :  { %899 = vst.msk [vmem:[%s2238_s5] sm:$0xff] %vm898_vm6, %v399_v59  ;;  %v411_v55 = vcvt.f32.s32 %v410_v12  ;;  %v426_v0 = vcvt.f32.s32 %v425_v54  ;;  %vm625_vm7 = vcmp.eq.s32.totalorder %v1664_v26, %v399_v59 }
 0x296   :  { %v1207_v46 = vsel %vm625_vm7, 1.0, %v1432_v50 }
 0x297   :  { %v414_v39 = vadd.s32 %v413_v30, %v411_v55  ;;  %v429_v48 = vadd.s32 %v428_v49, %v426_v0  ;;  %1343 = vmatprep.mubr.msk.f32.mxu1 %vm302_vm1, %v1207_v46  ;;  %882 = vst.msk [vmem:[%s2237_s4] sm:$0xff] %vm302_vm1, %v1207_v46  ;;  %v1102_v6 = vsel %vm302_vm1, %v1207_v46, 0.0 }
 0x298   :  { %v440_v58 = vpop.xlane.xlu1 %439  ;;  %v455_v60 = vpop.xlane.xlu0 %454 }
 0x299   :  { %900 = vst.msk [vmem:[%s2238_s5 + $0x8] sm:$0xff] %vm898_vm6, %v414_v39  ;;  %901 = vst.msk [vmem:[%s2238_s5 + $0x10] sm:$0xff] %vm898_vm6, %v429_v48  ;;  %v441_v18 = vcvt.f32.s32 %v440_v58  ;;  %v456_v56 = vcvt.f32.s32 %v455_v60  ;;  %vm626_vm8 = vcmp.eq.s32.totalorder %v1664_v26, %v414_v39  ;;  %vm627_vm9 = vcmp.eq.s32.totalorder %v1664_v26, %v429_v48 }
 0x29a   :  { %v1208_v29 = vsel %vm626_vm8, 1.0, %v1432_v50  ;;  %v1209_v7 = vsel %vm627_vm9, 1.0, %v1432_v50  ;;  %v578_v60 = vshll.u32 %v577_v11, 16 }
 0x29b   :  { %v444_v8 = vadd.s32 %v443_v61, %v441_v18  ;;  %v459_v2 = vadd.s32 %v458_v3, %v456_v56  ;;  %1344 = vmatmul.mubr.msk.f32.vlgmr.msra.gmra.mxu1 %vm302_vm1, %v1208_v29  ;;  %883 = vst.msk [vmem:[%s2237_s4 + $0x8] sm:$0xff] %vm302_vm1, %v1208_v29  ;;  %v1103_v4 = vsel %vm302_vm1, %v1208_v29, 0.0  ;;  %884 = vst.msk [vmem:[%s2237_s4 + $0x10] sm:$0xff] %vm302_vm1, %v1209_v7  ;;  %v1105_v17 = vsel %vm302_vm1, %v1209_v7, 0.0 }
 0x29c   :  { %v1104_v36 = vadd.f32 %v1103_v4, %v1102_v6  ;;  %v470_v16 = vpop.xlane.xlu1 %469  ;;  %1346 = vmatprep.mubr.msk.f32.mxu1 %vm302_vm1, %v1209_v7  ;;  %v485_v14 = vpop.xlane.xlu0 %484  ;;  %v592_v61 = vcvt.f32.s32 %v1877_v45  ;;  %v607_v18 = vcvt.f32.s32 %v1879_v23 }
 0x29d   :  { %902 = vst.msk [vmem:[%s2238_s5 + $0x18] sm:$0xff] %vm898_vm6, %v444_v8  ;;  %903 = vst.msk [vmem:[%s2238_s5 + $0x20] sm:$0xff] %vm898_vm6, %v459_v2  ;;  %v471_v15 = vcvt.f32.s32 %v470_v16  ;;  %v486_v20 = vcvt.f32.s32 %v485_v14  ;;  %vm628_vm10 = vcmp.eq.s32.totalorder %v1664_v26, %v444_v8  ;;  %vm629_vm11 = vcmp.eq.s32.totalorder %v1664_v26, %v459_v2 }
 0x29e   :  { %v1106_v44 = vadd.f32 %v1105_v17, %v1104_v36  ;;  %v1210_v28 = vsel %vm628_vm10, 1.0, %v1432_v50  ;;  %v1211_v32 = vsel %vm629_vm11, 1.0, %v1432_v50  ;;  %v593_v2 = vshll.u32 %v592_v61, 16  ;;  %v1374_v61 = vld [vmem:[%s2233_s0 + $0x18] sm:$0xff] }
 0x29f   :  { %v474_v27 = vadd.s32 %v473_v57, %v471_v15  ;;  %v489_v62 = vadd.s32 %v488_v22, %v486_v20  ;;  %1347 = vmatmul.mubr.msk.f32.gmra.mxu1 %vm302_vm1, %v1210_v28  ;;  %885 = vst.msk [vmem:[%s2237_s4 + $0x18] sm:$0xff] %vm302_vm1, %v1210_v28  ;;  %v1107_v63 = vsel %vm302_vm1, %v1210_v28, 0.0  ;;  %886 = vst.msk [vmem:[%s2237_s4 + $0x20] sm:$0xff] %vm302_vm1, %v1211_v32  ;;  %v1109_v47 = vsel %vm302_vm1, %v1211_v32, 0.0 }
 0x2a0   :  { %v1108_v13 = vadd.f32 %v1107_v63, %v1106_v44  ;;  %v500_v41 = vpop.xlane.xlu1 %499  ;;  %1349 = vmatprep.mubr.msk.f32.mxu1 %vm302_vm1, %v1211_v32  ;;  %v515_v53 = vpop.xlane.xlu0 %514  ;;  %v608_v36 = vshll.u32 %v607_v18, 16  ;;  %v622_v16 = vcvt.f32.s32 %v1886_v37 }
 0x2a1   :  { %904 = vst.msk [vmem:[%s2238_s5 + $0x28] sm:$0xff] %vm898_vm6, %v474_v27  ;;  %905 = vst.msk [vmem:[%s2238_s5 + $0x30] sm:$0xff] %vm898_vm6, %v489_v62  ;;  %v501_v43 = vcvt.f32.s32 %v500_v41  ;;  %v516_v9 = vcvt.f32.s32 %v515_v53  ;;  %vm630_vm12 = vcmp.eq.s32.totalorder %v1664_v26, %v474_v27  ;;  %vm631_vm13 = vcmp.eq.s32.totalorder %v1664_v26, %v489_v62 }
 0x2a2   :  { %v1110_v51 = vadd.f32 %v1109_v47, %v1108_v13  ;;  %v1212_v10 = vsel %vm630_vm12, 1.0, %v1432_v50  ;;  %v1213_v52 = vsel %vm631_vm13, 1.0, %v1432_v50  ;;  %v623_v63 = vshll.u32 %v622_v16, 16 }
 0x2a3   :  { %v504_v59 = vadd.s32 %v503_v24, %v501_v43  ;;  %v519_v30 = vadd.s32 %v518_v35, %v516_v9  ;;  %1350 = vmatmul.mubr.msk.f32.gmra.mxu1 %vm302_vm1, %v1212_v10  ;;  %887 = vst.msk [vmem:[%s2237_s4 + $0x28] sm:$0xff] %vm302_vm1, %v1212_v10  ;;  %v1111_v38 = vsel %vm302_vm1, %v1212_v10, 0.0  ;;  %888 = vst.msk [vmem:[%s2237_s4 + $0x30] sm:$0xff] %vm302_vm1, %v1213_v52  ;;  %v1113_v49 = vsel %vm302_vm1, %v1213_v52, 0.0 }
 0x2a4   :  { %v1112_v12 = vadd.f32 %v1111_v38, %v1110_v51  ;;  %v530_v54 = vpop.xlane.xlu1 %529  ;;  %1352 = vmatprep.mubr.msk.f32.mxu1 %vm302_vm1, %v1213_v52  ;;  %v545_v55 = vpop.xlane.xlu0 %544 }
 0x2a5   :  { %906 = vst.msk [vmem:[%s2238_s5 + $0x38] sm:$0xff] %vm898_vm6, %v504_v59  ;;  %907 = vst.msk [vmem:[%s2238_s5 + $0x40] sm:$0xff] %vm898_vm6, %v519_v30  ;;  %v531_v0 = vcvt.f32.s32 %v530_v54  ;;  %v546_v1 = vcvt.f32.s32 %v545_v55  ;;  %vm632_vm14 = vcmp.eq.s32.totalorder %v1664_v26, %v504_v59  ;;  %vm633_vm15 = vcmp.eq.s32.totalorder %v1664_v26, %v519_v30 }
 0x2a6   :  { %v1114_v46 = vadd.f32 %v1113_v49, %v1112_v12  ;;  %v1214_v39 = vsel %vm632_vm14, 1.0, %v1432_v50  ;;  %v1215_v48 = vsel %vm633_vm15, 1.0, %v1432_v50 }
 0x2a7   :  { %v534_v3 = vadd.s32 %v533_v31, %v531_v0  ;;  %v549_v5 = vadd.s32 %v548_v42, %v546_v1  ;;  %1353 = vmatmul.mubr.msk.f32.gmra.mxu1 %vm302_vm1, %v1214_v39  ;;  %889 = vst.msk [vmem:[%s2237_s4 + $0x38] sm:$0xff] %vm302_vm1, %v1214_v39  ;;  %v1115_v58 = vsel %vm302_vm1, %v1214_v39, 0.0  ;;  %890 = vst.msk [vmem:[%s2237_s4 + $0x40] sm:$0xff] %vm302_vm1, %v1215_v48  ;;  %v1117_v57 = vsel %vm302_vm1, %v1215_v48, 0.0  ;;  %v1373_v1 = vld [vmem:[%s2233_s0] sm:$0xff] }
 0x2a8   :  { %v1116_v45 = vadd.f32 %v1115_v58, %v1114_v46  ;;  %v560_v56 = vpop.xlane.xlu1 %559  ;;  %1355 = vmatprep.mubr.msk.f32.mxu1 %vm302_vm1, %v1215_v48  ;;  %v575_v21 = vpop.xlane.xlu0 %574 }
 0x2a9   :  { %908 = vst.msk [vmem:[%s2238_s5 + $0x48] sm:$0xff] %vm898_vm6, %v534_v3  ;;  %909 = vst.msk [vmem:[%s2238_s5 + $0x50] sm:$0xff] %vm898_vm6, %v549_v5  ;;  %v561_v29 = vcvt.f32.s32 %v560_v56  ;;  %v576_v7 = vcvt.f32.s32 %v575_v21  ;;  %vm634_vm2 = vcmp.eq.s32.totalorder %v1664_v26, %v534_v3  ;;  %vm635_vm3 = vcmp.eq.s32.totalorder %v1664_v26, %v549_v5 }
 0x2aa   :  { %v1118_v23 = vadd.f32 %v1117_v57, %v1116_v45  ;;  %v1216_v6 = vsel %vm634_vm2, 1.0, %v1432_v50  ;;  %v1217_v8 = vsel %vm635_vm3, 1.0, %v1432_v50 }
 0x2ab   :  { %v564_v4 = vadd.s32 %v563_v19, %v561_v29  ;;  %v579_v22 = vadd.s32 %v578_v60, %v576_v7  ;;  %1356 = vmatmul.mubr.msk.f32.gmra.mxu1 %vm302_vm1, %v1216_v6  ;;  %891 = vst.msk [vmem:[%s2237_s4 + $0x48] sm:$0xff] %vm302_vm1, %v1216_v6  ;;  %v1119_v34 = vsel %vm302_vm1, %v1216_v6, 0.0  ;;  %892 = vst.msk [vmem:[%s2237_s4 + $0x50] sm:$0xff] %vm302_vm1, %v1217_v8  ;;  %v1121_v15 = vsel %vm302_vm1, %v1217_v8, 0.0  ;;  %v1375_v60 = vld [vmem:[%s2233_s0 + $0x10] sm:$0xff]  ;;  %v1376_v29 = vld [vmem:[%s2233_s0 + $0x28] sm:$0xff] }
 0x2ac   :  { %v1120_v17 = vadd.f32 %v1119_v34, %v1118_v23  ;;  %v590_v14 = vpop.xlane.xlu1 %589  ;;  %1358 = vmatprep.mubr.msk.f32.mxu1 %vm302_vm1, %v1217_v8  ;;  %v605_v20 = vpop.xlane.xlu0 %604 }
 0x2ad   :  { %910 = vst.msk [vmem:[%s2238_s5 + $0x58] sm:$0xff] %vm898_vm6, %v564_v4  ;;  %911 = vst.msk [vmem:[%s2238_s5 + $0x60] sm:$0xff] %vm898_vm6, %v579_v22  ;;  %v591_v24 = vcvt.f32.s32 %v590_v14  ;;  %v606_v44 = vcvt.f32.s32 %v605_v20  ;;  %vm636_vm4 = vcmp.eq.s32.totalorder %v1664_v26, %v564_v4  ;;  %vm637_vm5 = vcmp.eq.s32.totalorder %v1664_v26, %v579_v22  ;;  %v1378_v14 = vld [vmem:[%s2233_s0 + $0x38] sm:$0xff] }
 0x2ae   :  { %v1122_v37 = vadd.f32 %v1121_v15, %v1120_v17  ;;  %v1218_v28 = vsel %vm636_vm4, 1.0, %v1432_v50  ;;  %v1219_v32 = vsel %vm637_vm5, 1.0, %v1432_v50 }
 0x2af   :  { %v594_v25 = vadd.s32 %v593_v2, %v591_v24  ;;  %v609_v27 = vadd.s32 %v608_v36, %v606_v44  ;;  %1359 = vmatmul.mubr.msk.f32.gmra.mxu1 %vm302_vm1, %v1218_v28  ;;  %893 = vst.msk [vmem:[%s2237_s4 + $0x58] sm:$0xff] %vm302_vm1, %v1218_v28  ;;  %v1123_v62 = vsel %vm302_vm1, %v1218_v28, 0.0  ;;  %894 = vst.msk [vmem:[%s2237_s4 + $0x60] sm:$0xff] %vm302_vm1, %v1219_v32  ;;  %v1125_v41 = vsel %vm302_vm1, %v1219_v32, 0.0  ;;  %v1377_v2 = vld [vmem:[%s2233_s0 + $0x20] sm:$0xff] }
 0x2b0   :  { %v1124_v35 = vadd.f32 %v1123_v62, %v1122_v37  ;;  %v620_v40 = vpop.xlane.xlu1 %619  ;;  %1361 = vmatprep.mubr.msk.f32.mxu1 %vm302_vm1, %v1219_v32  ;;  %v1379_v37 = vld [vmem:[%s2233_s0 + $0x30] sm:$0xff] }
 0x2b1   :  { %912 = vst.msk [vmem:[%s2238_s5 + $0x68] sm:$0xff] %vm898_vm6, %v594_v25  ;;  %913 = vst.msk [vmem:[%s2238_s5 + $0x70] sm:$0xff] %vm898_vm6, %v609_v27  ;;  %v621_v13 = vcvt.f32.s32 %v620_v40  ;;  %vm638_vm7 = vcmp.eq.s32.totalorder %v1664_v26, %v594_v25  ;;  %vm639_vm8 = vcmp.eq.s32.totalorder %v1664_v26, %v609_v27 }
 0x2b2   :  { %v1126_v47 = vadd.f32 %v1125_v41, %v1124_v35  ;;  %v1220_v53 = vsel %vm638_vm7, 1.0, %v1432_v50  ;;  %v1221_v43 = vsel %vm639_vm8, 1.0, %v1432_v50  ;;  %v1380_v35 = vld [vmem:[%s2233_s0 + $0x48] sm:$0xff] }
 0x2b3   :  { %v624_v9 = vadd.s32 %v623_v63, %v621_v13  ;;  %1362 = vmatmul.mubr.msk.f32.gmra.mxu1 %vm302_vm1, %v1220_v53  ;;  %895 = vst.msk [vmem:[%s2237_s4 + $0x68] sm:$0xff] %vm302_vm1, %v1220_v53  ;;  %v1127_v33 = vsel %vm302_vm1, %v1220_v53, 0.0  ;;  %896 = vst.msk [vmem:[%s2237_s4 + $0x70] sm:$0xff] %vm302_vm1, %v1221_v43  ;;  %v1129_v10 = vsel %vm302_vm1, %v1221_v43, 0.0  ;;  %v1381_v53 = vld [vmem:[%s2233_s0 + $0x40] sm:$0xff] }
 0x2b4   :  { %v1128_v51 = vadd.f32 %v1127_v33, %v1126_v47  ;;  %1364 = vmatprep.mubr.msk.f32.mxu1 %vm302_vm1, %v1221_v43 }
 0x2b5   :  { %vm640_vm9 = vcmp.eq.s32.totalorder %v1664_v26, %v624_v9  ;;  %914 = vst.msk [vmem:[%s2238_s5 + $0x78] sm:$0xff] %vm898_vm6, %v624_v9 }
 0x2b6   :  { %v1130_v52 = vadd.f32 %v1129_v10, %v1128_v51  ;;  %v1222_v31 = vsel %vm640_vm9, 1.0, %v1432_v50  ;;  %v1372_v50 = vld [vmem:[%s2233_s0 + $0x8] sm:$0xff] }
 0x2b7   :  { %1365 = vmatmul.mubr.msk.f32.gmra.mxu1 %vm302_vm1, %v1222_v31  ;;  %897 = vst.msk [vmem:[%s2237_s4 + $0x78] sm:$0xff] %vm302_vm1, %v1222_v31  ;;  %v1131_v59 = vsel %vm302_vm1, %v1222_v31, 0.0  ;;  %v1382_v31 = vld [vmem:[%s2233_s0 + $0x58] sm:$0xff] }
 0x2b8   :  { %v1132_v26 = vadd.f32 %v1131_v59, %v1130_v52 }
 0x2ba   :  { %v1133_v30 = vrot.slane %v1132_v26, 4 }
 0x2bc   :  { %v1134_v38 = vadd.f32 %v1133_v30, %v1132_v26 }
 0x2be   :  { %v1135_v42 = vrot.slane %v1134_v38, 2 }
 0x2c0   :  { %v1136_v11 = vadd.f32 %v1135_v42, %v1134_v38  ;;  %v1383_v42 = vld [vmem:[%s2233_s0 + $0x50] sm:$0xff] }
 0x2c2   :  { %v1137_v12 = vrot.slane %v1136_v11, 1 }
 0x2c4   :  { %v1138_v54 = vadd.f32 %v1137_v12, %v1136_v11 }
 0x2c6   :  { %1141 = vst.msk [vmem:[#allocation4] sm:$0xff] %vm302_vm1, %v1138_v54 }
 0x35b   :  { %v1345_v49 = vpop.f32.mrf.mxu1 }
 0x35c   :  { %867 = vst.msk [vmem:[%s2236_s3 + $0x8] sm:$0xff] %vm46_vm0, %v1345_v49  ;;  %v999_v55 = vsub.f32 %v1345_v49, %v1372_v50 }
 0x35d   :  { %v787_v0 = vpop.f32.mrf.mxu1 }
 0x35e   :  { %866 = vst.msk [vmem:[%s2236_s3] sm:$0xff] %vm46_vm0, %v787_v0  ;;  %v998_v19 = vsub.f32 %v787_v0, %v1373_v1  ;;  %v1015_v39 = vmul.f32 %v999_v55, %v999_v55  ;;  %v1384_v0 = vld [vmem:[%s2233_s0 + $0x68] sm:$0xff] }
 0x35f   :  { %v1348_v46 = vpop.f32.mrf.mxu1 }
 0x360   :  { %v1014_v48 = vmul.f32 %v998_v19, %v998_v19  ;;  %869 = vst.msk [vmem:[%s2236_s3 + $0x18] sm:$0xff] %vm46_vm0, %v1348_v46  ;;  %v1001_v3 = vsub.f32 %v1348_v46, %v1374_v61  ;;  %v1047_v56 = vsel %vm46_vm0, %v1015_v39, 0.0 }
 0x361   :  { %v797_v5 = vpop.f32.mrf.mxu1 }
 0x362   :  { %v1046_v58 = vsel %vm46_vm0, %v1014_v48, 0.0  ;;  %868 = vst.msk [vmem:[%s2236_s3 + $0x10] sm:$0xff] %vm46_vm0, %v797_v5  ;;  %v1000_v18 = vsub.f32 %v797_v5, %v1375_v60  ;;  %v1017_v57 = vmul.f32 %v1001_v3, %v1001_v3  ;;  %v1385_v48 = vld [vmem:[%s2233_s0 + $0x60] sm:$0xff] }
 0x363   :  { %v1351_v45 = vpop.f32.mrf.mxu1  ;;  %v1048_v23 = vadd.f32 %v1047_v56, %v1046_v58 }
 0x364   :  { %v1016_v21 = vmul.f32 %v1000_v18, %v1000_v18  ;;  %871 = vst.msk [vmem:[%s2236_s3 + $0x28] sm:$0xff] %vm46_vm0, %v1351_v45  ;;  %v1003_v7 = vsub.f32 %v1351_v45, %v1376_v29  ;;  %v1051_v36 = vsel %vm46_vm0, %v1017_v57, 0.0  ;;  %v1386_v45 = vld [vmem:[%s2233_s0 + $0x78] sm:$0xff] }
 0x365   :  { %v807_v6 = vpop.f32.mrf.mxu1 }
 0x366   :  { %v1049_v8 = vsel %vm46_vm0, %v1016_v21, 0.0  ;;  %870 = vst.msk [vmem:[%s2236_s3 + $0x20] sm:$0xff] %vm46_vm0, %v807_v6  ;;  %v1002_v4 = vsub.f32 %v807_v6, %v1377_v2  ;;  %v1019_v16 = vmul.f32 %v1003_v7, %v1003_v7  ;;  %v1387_v7 = vld [vmem:[%s2233_s0 + $0x70] sm:$0xff] }
 0x367   :  { %v1050_v22 = vadd.f32 %v1049_v8, %v1048_v23  ;;  %v1354_v34 = vpop.f32.mrf.mxu1 }
 0x368   :  { %v1018_v17 = vmul.f32 %v1002_v4, %v1002_v4  ;;  %873 = vst.msk [vmem:[%s2236_s3 + $0x38] sm:$0xff] %vm46_vm0, %v1354_v34  ;;  %v1005_v15 = vsub.f32 %v1354_v34, %v1378_v14  ;;  %v1055_v27 = vsel %vm46_vm0, %v1019_v16, 0.0 }
 0x369   :  { %v1052_v20 = vadd.f32 %v1051_v36, %v1050_v22  ;;  %v817_v24 = vpop.f32.mrf.mxu1 }
 0x36a   :  { %v1053_v44 = vsel %vm46_vm0, %v1018_v17, 0.0  ;;  %872 = vst.msk [vmem:[%s2236_s3 + $0x30] sm:$0xff] %vm46_vm0, %v817_v24  ;;  %v1004_v28 = vsub.f32 %v817_v24, %v1379_v37  ;;  %v1021_v62 = vmul.f32 %v1005_v15, %v1005_v15 }
 0x36b   :  { %v1054_v32 = vadd.f32 %v1053_v44, %v1052_v20  ;;  %v1357_v25 = vpop.f32.mrf.mxu1 }
 0x36c   :  { %v1020_v63 = vmul.f32 %v1004_v28, %v1004_v28  ;;  %875 = vst.msk [vmem:[%s2236_s3 + $0x48] sm:$0xff] %vm46_vm0, %v1357_v25  ;;  %v1007_v40 = vsub.f32 %v1357_v25, %v1380_v35  ;;  %v1059_v51 = vsel %vm46_vm0, %v1021_v62, 0.0 }
 0x36d   :  { %v1056_v13 = vadd.f32 %v1055_v27, %v1054_v32  ;;  %v827_v41 = vpop.f32.mrf.mxu1 }
 0x36e   :  { %v1057_v47 = vsel %vm46_vm0, %v1020_v63, 0.0  ;;  %874 = vst.msk [vmem:[%s2236_s3 + $0x40] sm:$0xff] %vm46_vm0, %v827_v41  ;;  %v1006_v43 = vsub.f32 %v827_v41, %v1381_v53  ;;  %v1023_v10 = vmul.f32 %v1007_v40, %v1007_v40 }
 0x36f   :  { %v1058_v9 = vadd.f32 %v1057_v47, %v1056_v13  ;;  %v1360_v33 = vpop.f32.mrf.mxu1 }
 0x370   :  { %v1022_v52 = vmul.f32 %v1006_v43, %v1006_v43  ;;  %877 = vst.msk [vmem:[%s2236_s3 + $0x58] sm:$0xff] %vm46_vm0, %v1360_v33  ;;  %v1009_v59 = vsub.f32 %v1360_v33, %v1382_v31  ;;  %v1063_v49 = vsel %vm46_vm0, %v1023_v10, 0.0 }
 0x371   :  { %v1060_v26 = vadd.f32 %v1059_v51, %v1058_v9  ;;  %v837_v30 = vpop.f32.mrf.mxu1 }
 0x372   :  { %v1061_v38 = vsel %vm46_vm0, %v1022_v52, 0.0  ;;  %876 = vst.msk [vmem:[%s2236_s3 + $0x50] sm:$0xff] %vm46_vm0, %v837_v30  ;;  %v1008_v11 = vsub.f32 %v837_v30, %v1383_v42  ;;  %v1025_v50 = vmul.f32 %v1009_v59, %v1009_v59 }
 0x373   :  { %v1062_v12 = vadd.f32 %v1061_v38, %v1060_v26  ;;  %v1363_v54 = vpop.f32.mrf.mxu1 }
 0x374   :  { %v1024_v55 = vmul.f32 %v1008_v11, %v1008_v11  ;;  %879 = vst.msk [vmem:[%s2236_s3 + $0x68] sm:$0xff] %vm46_vm0, %v1363_v54  ;;  %v1011_v1 = vsub.f32 %v1363_v54, %v1384_v0  ;;  %v1067_v58 = vsel %vm46_vm0, %v1025_v50, 0.0 }
 0x375   :  { %v1064_v19 = vadd.f32 %v1063_v49, %v1062_v12  ;;  %v847_v46 = vpop.f32.mrf.mxu1 }
 0x376   :  { %v1065_v39 = vsel %vm46_vm0, %v1024_v55, 0.0  ;;  %878 = vst.msk [vmem:[%s2236_s3 + $0x60] sm:$0xff] %vm46_vm0, %v847_v46  ;;  %v1010_v61 = vsub.f32 %v847_v46, %v1385_v48  ;;  %v1027_v60 = vmul.f32 %v1011_v1, %v1011_v1 }
 0x377   :  { %v1066_v3 = vadd.f32 %v1065_v39, %v1064_v19  ;;  %v1366_v5 = vpop.f32.mrf.mxu1 }
 0x378   :  { %v1026_v18 = vmul.f32 %v1010_v61, %v1010_v61  ;;  %881 = vst.msk [vmem:[%s2236_s3 + $0x78] sm:$0xff] %vm46_vm0, %v1366_v5  ;;  %v1013_v56 = vsub.f32 %v1366_v5, %v1386_v45  ;;  %v1071_v8 = vsel %vm46_vm0, %v1027_v60, 0.0 }
 0x379   :  { %v1068_v57 = vadd.f32 %v1067_v58, %v1066_v3  ;;  %v857_v21 = vpop.f32.mrf.mxu1 }
 0x37a   :  { %v1069_v29 = vsel %vm46_vm0, %v1026_v18, 0.0  ;;  %880 = vst.msk [vmem:[%s2236_s3 + $0x70] sm:$0xff] %vm46_vm0, %v857_v21  ;;  %v1012_v23 = vsub.f32 %v857_v21, %v1387_v7  ;;  %v1029_v2 = vmul.f32 %v1013_v56, %v1013_v56  ;;  %s1164_s3 = sshll.u32 %s1433_s23, 4  ;;  %s1165_s3 = int_to_ptr.vmem [resolvable:$true] %s1164_s3 }
 0x37b   :  { %v1070_v6 = vadd.f32 %v1069_v29, %v1068_v57  ;;  %s1388_s24 = scalar_lea.vmem %s1165_s3, 128  ;;  %p1393_p1 = scmp.lt.s32.totalorder %s1165_s3, %s1165_s3 }
 0x37c   :  { %v1028_v4 = vmul.f32 %v1012_v23, %v1012_v23  ;;  %v1075_v16 = vsel %vm46_vm0, %v1029_v2, 0.0  ;;  %p1389_p0 = scmp.ne.s32.totalorder %s1165_s3, %s1388_s24  ;;  %p1394_p2 = scmp.lt.s32.totalorder %s1388_s24, %s1388_s24 }
 0x37d   :  { %v1072_v22 = vadd.f32 %v1071_v8, %v1070_v6 }
 0x37e   :  { %v1073_v34 = vsel %vm46_vm0, %v1028_v4, 0.0  ;;  %p1395_p3 = por %p1394_p2, %p1393_p1 }
 0x37f   :  { %v1074_v36 = vadd.f32 %v1073_v34, %v1072_v22 }
 0x380   :  { %p1396_p4 = pnand %p1395_p3, %p1389_p0 }
 0x381   :  { %v1076_v17 = vadd.f32 %v1075_v16, %v1074_v36 }
 0x383   :  { %1077 = vadd.xlane.f32.xlu0 %v1076_v17 }
 0x384   :  { %1399 = shalt.err (!%p1396_p4)
}
 0x385   :  { %1167 = dma.vmem_to_hbm [thread:$0]  %s1165_s3, 128, %s2240_s7, [#allocation5]  }
 0x386   :  { %s1434_s2 = smov [#allocation2]  }
 0x387   :  { %s1154_s26 = sshll.u32 %s1434_s2, 4  ;;  %s1155_s26 = int_to_ptr.vmem [resolvable:$true] %s1154_s26 }
 0x388   :  { %s1408_s28 = scalar_lea.vmem %s1155_s26, 128  ;;  %p1413_p6 = scmp.lt.s32.totalorder %s1155_s26, %s1155_s26 }
 0x389   :  { %p1409_p5 = scmp.ne.s32.totalorder %s1155_s26, %s1408_s28  ;;  %p1414_p7 = scmp.lt.s32.totalorder %s1408_s28, %s1408_s28 }
 0x38b   :  { %p1415_p8 = por %p1414_p7, %p1413_p6 }
 0x38d   :  { %p1416_p9 = pnand %p1415_p8, %p1409_p5 }
 0x40c   :  { %v1078_v14 = vpop.xlane.xlu0 %1077 }
 0x40d   :  { %v1079_v15 = vrot.slane %v1078_v14, 4 }
 0x40f   :  { %v1080_v20 = vadd.f32 %v1079_v15, %v1078_v14 }
 0x411   :  { %v1081_v24 = vrot.slane %v1080_v20, 2 }
 0x413   :  { %v1082_v44 = vadd.f32 %v1081_v24, %v1080_v20 }
 0x415   :  { %v1083_v37 = vrot.slane %v1082_v44, 1 }
 0x417   :  { %v1084_v28 = vadd.f32 %v1083_v37, %v1082_v44 }
 0x419   :  { %1367 = vpush %v1084_v28 }
 0x44a   :  { %s1368_s27 = spop %1367 }
 0x44b   :  { %v1139_v32 = vstv %s1368_s27 }
 0x44c   :  { %1140 = vst [vmem:[#allocation2] sm:$0xff] %v1139_v32 }
 0x44d   :  { %1419 = shalt.err (!%p1416_p9)
}
 0x44e   :  { %1157 = dma.vmem_to_hbm [thread:$0]  %s1155_s26, 128, %s2239_s6, [#allocation3]  }
 0x44f   :  { %1428 = dma.done.wait [#allocation3], 128  }
 0x450   :  { %1429 = vsyncadd [#allocation3], 4294967168 }
 0x451   :  { %1430 = dma.done.wait [#allocation5], 128  }
 0x452   :  { %1431 = vsyncadd [#allocation5], 4294967168 }
 0x453   :  { %1180 = vsyncpa [#allocation3], 1 }
 0x454   :  { %1181 = vsyncpa [#allocation5], 1 }

</bundles_post_ra>
